<compile_context>
chip_gen: v7x
topology: tpu7x:2x2x1
jax: 0.10.0
libtpu: 0.0.40
codegen_flags: <defaults>
</compile_context>

<pallas_src>
import jax
import jax.numpy as jnp
from jax.experimental import pallas as pl
from jax.experimental.pallas import tpu as pltpu


def _round_up(x, m):
    return ((x + m - 1) // m) * m


def _actor_kernel(s_ref, w1_ref, b1_ref, w2_ref, b2_ref,
                  w3_ref, b3_ref, w4_ref, b4_ref, out_ref):
    """One batch tile (batch on the lane axis).

    out = tanh(W4 @ relu(W3 @ relu(W2 @ relu(W1 @ x + b1) + b2) + b3) + b4)
    """
    x = s_ref[...]                                     # [state_dim, tile_m] f32

    # fc1 + relu  (MXU matmul, f32 accumulate; bias/relu on the VPU)
    h = jnp.dot(w1_ref[...], x, preferred_element_type=jnp.float32) + b1_ref[...]
    h = jnp.maximum(h, 0.0)

    # fc2 + relu
    h = jnp.dot(w2_ref[...], h, preferred_element_type=jnp.float32) + b2_ref[...]
    h = jnp.maximum(h, 0.0)

    # fc3 + relu
    h = jnp.dot(w3_ref[...], h, preferred_element_type=jnp.float32) + b3_ref[...]
    h = jnp.maximum(h, 0.0)

    # fc4 + tanh  (tanh uses the EUP slot -> effectively free next to the MXU work)
    h = jnp.dot(w4_ref[...], h, preferred_element_type=jnp.float32) + b4_ref[...]
    out_ref[...] = jnp.tanh(h).astype(out_ref.dtype)


def _resident_spec(arr):
    # Full-array block with a constant index_map: operand stays resident in
    # VMEM across every grid step.  Helper function (arg-bound `arr`) avoids
    # the late-binding-lambda bug of building specs in a comprehension.
    return pl.BlockSpec(arr.shape, lambda i: (0, 0))


def actor_small_one_head_forward(state, params, *, tile_m=8192,
                                 out_dtype=jnp.float32):
    """state: [n, state_dim] f32.
    params: w1..w4 as [out, in] (torch layout), b1..b4 as [out, 1]."""
    n, state_dim = state.shape
    action_dim = params["w4"].shape[0]

    # Lane-axis batch tile: multiple of 128, no larger than the (rounded-up)
    # batch.  For large batches cap at ~ceil(n/2) so the grid keeps >=2 steps
    # and v7x's two TensorCores both get work.
    tile = min(_round_up(max(tile_m, 128), 128), _round_up(n, 128))
    if n >= 512:
        tile = min(tile, _round_up(pl.cdiv(n, 2), 128))
    tile = max(tile, 128)
    grid = (pl.cdiv(n, tile),)

    # Layout plumbing only: the [n, state_dim] -> [state_dim, n] transpose is
    # tiny (state_dim rows) and buys lane-dense DMAs/stores in the kernel.
    state_t = state.astype(jnp.float32).T              # [state_dim, n]

    w1 = params["w1"].astype(jnp.float32)
    w2 = params["w2"].astype(jnp.float32)
    w3 = params["w3"].astype(jnp.float32)
    w4 = params["w4"].astype(jnp.float32)
    b1 = params["b1"].astype(jnp.float32)
    b2 = params["b2"].astype(jnp.float32)
    b3 = params["b3"].astype(jnp.float32)
    b4 = params["b4"].astype(jnp.float32)

    in_specs = [
        pl.BlockSpec((state_dim, tile), lambda i: (0, i)),   # streamed batch tile
        _resident_spec(w1), _resident_spec(b1),
        _resident_spec(w2), _resident_spec(b2),
        _resident_spec(w3), _resident_spec(b3),
        _resident_spec(w4), _resident_spec(b4),
    ]
    out_spec = pl.BlockSpec((action_dim, tile), lambda i: (0, i))

    flops_per_row = 2 * (state_dim * 64 + 64 * 32 + 32 * 16 + 16 * action_dim)
    bytes_accessed = (
        int(state_t.size) * 4
        + sum(int(a.size) * 4 for a in (w1, w2, w3, w4, b1, b2, b3, b4))
        + n * action_dim * jnp.dtype(out_dtype).itemsize
    )
    cost = pl.CostEstimate(
        flops=n * flops_per_row,
        transcendentals=n * action_dim,
        bytes_accessed=bytes_accessed,
    )

    out_t = pl.pallas_call(
        _actor_kernel,
        grid=grid,
        in_specs=in_specs,
        out_specs=out_spec,
        out_shape=jax.ShapeDtypeStruct((action_dim, n), out_dtype),
        compiler_params=pltpu.CompilerParams(
            dimension_semantics=("parallel",),        # megacore-shard batch tiles
            vmem_limit_bytes=48 * 1024 * 1024,         # safe on v7x's 64 MiB VMEM
        ),
        cost_estimate=cost,
    )(state_t, w1, b1, w2, b2, w3, b3, w4, b4)

    return out_t.T                                      # [n, action_dim]


def init_params(key, state_dim, action_dim):
    """Deterministic synthetic init matching the PyTorch module.

    fc1..fc3 mimic nn.Linear default (uniform(-1/sqrt(in), 1/sqrt(in))),
    fc4 uses normal(mean=0, std=0.2) as in init_weights(self.fc4, 0.0, 0.2).
    Weights stored torch-style as [out, in]; biases as [out, 1].
    """
    dims = [(state_dim, 64), (64, 32), (32, 16), (16, action_dim)]
    params = {}
    keys = jax.random.split(key, 8)
    for i, (fin, fout) in enumerate(dims, start=1):
        kw, kb = keys[2 * (i - 1)], keys[2 * (i - 1) + 1]
        if i < 4:
            bound = 1.0 / jnp.sqrt(jnp.float32(fin))
            w = jax.random.uniform(kw, (fout, fin), jnp.float32, -bound, bound)
            b = jax.random.uniform(kb, (fout, 1), jnp.float32, -bound, bound)
        else:
            w = 0.2 * jax.random.normal(kw, (fout, fin), jnp.float32)
            b = 0.2 * jax.random.normal(kb, (fout, 1), jnp.float32)
        params[f"w{i}"] = w
        params[f"b{i}"] = b
    return params


def _reference_forward(state, params):
    x = jnp.maximum(state @ params["w1"].T + params["b1"].T, 0.0)
    x = jnp.maximum(x @ params["w2"].T + params["b2"].T, 0.0)
    x = jnp.maximum(x @ params["w3"].T + params["b3"].T, 0.0)
    return jnp.tanh(x @ params["w4"].T + params["b4"].T)


if __name__ == "__main__":
    key = jax.random.PRNGKey(0)
    k_state, k_params, k_big = jax.random.split(key, 3)

    state_dim = 8
    action_dim = 4
    params = init_params(k_params, state_dim, action_dim)

    # 1) Exact-semantics check at the module's natural small shape
    #    (single grid step, masked ragged lane tile).
    state_small = jax.random.normal(k_state, (2, state_dim), jnp.float32)
    out_small = jax.block_until_ready(
        actor_small_one_head_forward(state_small, params))
    ref_small = _reference_forward(state_small, params)
    assert out_small.shape == (2, action_dim)
    assert jnp.allclose(out_small, ref_small, atol=1e-4, rtol=1e-4), (
        out_small, ref_small)

    # 2) Multi-step grid with a ragged last tile (n=1040 -> 2 grid steps).
    state_big = jax.random.normal(k_big, (1040, state_dim), jnp.float32)
    out_big = jax.block_until_ready(
        actor_small_one_head_forward(state_big, params))
    ref_big = _reference_forward(state_big, params)
    assert out_big.shape == (1040, action_dim)
    assert jnp.allclose(out_big, ref_big, atol=1e-4, rtol=1e-4)

    print("KERNEL_OK")
</pallas_src>

<mosaic_0001>
module attributes {stable_mosaic.version = 11 : i64} {
  func.func @_actor_kernel(%arg0: i32, %arg1: memref<8x128xf32, #tpu.memory_space<vmem>>, %arg2: memref<64x8xf32, #tpu.memory_space<vmem>>, %arg3: memref<64x1xf32, #tpu.memory_space<vmem>>, %arg4: memref<32x64xf32, #tpu.memory_space<vmem>>, %arg5: memref<32x1xf32, #tpu.memory_space<vmem>>, %arg6: memref<16x32xf32, #tpu.memory_space<vmem>>, %arg7: memref<16x1xf32, #tpu.memory_space<vmem>>, %arg8: memref<4x16xf32, #tpu.memory_space<vmem>>, %arg9: memref<4x1xf32, #tpu.memory_space<vmem>>, %arg10: memref<4x128xf32, #tpu.memory_space<vmem>>) attributes {dimension_semantics = [#tpu.dimension_semantics<parallel>], iteration_bounds = array<i64: 1>, scalar_prefetch = 0 : i64, scratch_operands = 0 : i64, tpu.core_type = #tpu.core_type<tc>, window_params = [{transform_indices = @transform_0, window_bounds = array<i64: 8, 128>}, {pipeline_mode = #tpu.pipeline_mode<synchronous>, transform_indices = @transform_1, window_bounds = array<i64: 64, 8>}, {pipeline_mode = #tpu.pipeline_mode<synchronous>, transform_indices = @transform_2, window_bounds = array<i64: 64, 1>}, {pipeline_mode = #tpu.pipeline_mode<synchronous>, transform_indices = @transform_3, window_bounds = array<i64: 32, 64>}, {pipeline_mode = #tpu.pipeline_mode<synchronous>, transform_indices = @transform_4, window_bounds = array<i64: 32, 1>}, {pipeline_mode = #tpu.pipeline_mode<synchronous>, transform_indices = @transform_5, window_bounds = array<i64: 16, 32>}, {pipeline_mode = #tpu.pipeline_mode<synchronous>, transform_indices = @transform_6, window_bounds = array<i64: 16, 1>}, {pipeline_mode = #tpu.pipeline_mode<synchronous>, transform_indices = @transform_7, window_bounds = array<i64: 4, 16>}, {pipeline_mode = #tpu.pipeline_mode<synchronous>, transform_indices = @transform_8, window_bounds = array<i64: 4, 1>}, {transform_indices = @transform_9, window_bounds = array<i64: 4, 128>}]} {
    %c0 = arith.constant 0 : index
    %c0_0 = arith.constant 0 : index
    %0 = vector.load %arg1[%c0, %c0_0] : memref<8x128xf32, #tpu.memory_space<vmem>>, vector<8x128xf32>
    %c0_1 = arith.constant 0 : index
    %c0_2 = arith.constant 0 : index
    %1 = vector.load %arg2[%c0_1, %c0_2] : memref<64x8xf32, #tpu.memory_space<vmem>>, vector<64x8xf32>
    %cst = arith.constant dense<0.000000e+00> : vector<64x128xf32>
    %2 = tpu.matmul %1, %0, %cst {dimension_numbers = #tpu.dot_dimension_numbers<[1], [0], [0], [1], [0, 0, 1, 1], [], []>} : vector<64x8xf32>, vector<8x128xf32>, vector<64x128xf32> -> vector<64x128xf32>
    %c0_3 = arith.constant 0 : index
    %c0_4 = arith.constant 0 : index
    %3 = vector.load %arg3[%c0_3, %c0_4] : memref<64x1xf32, #tpu.memory_space<vmem>>, vector<64x1xf32>
    %4 = vector.broadcast %3 : vector<64x1xf32> to vector<64x128xf32>
    %5 = arith.addf %2, %4 : vector<64x128xf32>
    %cst_5 = arith.constant 0.000000e+00 : f32
    %6 = vector.broadcast %cst_5 : f32 to vector<64x128xf32>
    %7 = arith.maximumf %5, %6 : vector<64x128xf32>
    %c0_6 = arith.constant 0 : index
    %c0_7 = arith.constant 0 : index
    %8 = vector.load %arg4[%c0_6, %c0_7] : memref<32x64xf32, #tpu.memory_space<vmem>>, vector<32x64xf32>
    %cst_8 = arith.constant dense<0.000000e+00> : vector<32x128xf32>
    %9 = tpu.matmul %8, %7, %cst_8 {dimension_numbers = #tpu.dot_dimension_numbers<[1], [0], [0], [1], [0, 0, 1, 1], [], []>} : vector<32x64xf32>, vector<64x128xf32>, vector<32x128xf32> -> vector<32x128xf32>
    %c0_9 = arith.constant 0 : index
    %c0_10 = arith.constant 0 : index
    %10 = vector.load %arg5[%c0_9, %c0_10] : memref<32x1xf32, #tpu.memory_space<vmem>>, vector<32x1xf32>
    %11 = vector.broadcast %10 : vector<32x1xf32> to vector<32x128xf32>
    %12 = arith.addf %9, %11 : vector<32x128xf32>
    %cst_11 = arith.constant 0.000000e+00 : f32
    %13 = vector.broadcast %cst_11 : f32 to vector<32x128xf32>
    %14 = arith.maximumf %12, %13 : vector<32x128xf32>
    %c0_12 = arith.constant 0 : index
    %c0_13 = arith.constant 0 : index
    %15 = vector.load %arg6[%c0_12, %c0_13] : memref<16x32xf32, #tpu.memory_space<vmem>>, vector<16x32xf32>
    %cst_14 = arith.constant dense<0.000000e+00> : vector<16x128xf32>
    %16 = tpu.matmul %15, %14, %cst_14 {dimension_numbers = #tpu.dot_dimension_numbers<[1], [0], [0], [1], [0, 0, 1, 1], [], []>} : vector<16x32xf32>, vector<32x128xf32>, vector<16x128xf32> -> vector<16x128xf32>
    %c0_15 = arith.constant 0 : index
    %c0_16 = arith.constant 0 : index
    %17 = vector.load %arg7[%c0_15, %c0_16] : memref<16x1xf32, #tpu.memory_space<vmem>>, vector<16x1xf32>
    %18 = vector.broadcast %17 : vector<16x1xf32> to vector<16x128xf32>
    %19 = arith.addf %16, %18 : vector<16x128xf32>
    %cst_17 = arith.constant 0.000000e+00 : f32
    %20 = vector.broadcast %cst_17 : f32 to vector<16x128xf32>
    %21 = arith.maximumf %19, %20 : vector<16x128xf32>
    %c0_18 = arith.constant 0 : index
    %c0_19 = arith.constant 0 : index
    %22 = vector.load %arg8[%c0_18, %c0_19] : memref<4x16xf32, #tpu.memory_space<vmem>>, vector<4x16xf32>
    %cst_20 = arith.constant dense<0.000000e+00> : vector<4x128xf32>
    %23 = tpu.matmul %22, %21, %cst_20 {dimension_numbers = #tpu.dot_dimension_numbers<[1], [0], [0], [1], [0, 0, 1, 1], [], []>} : vector<4x16xf32>, vector<16x128xf32>, vector<4x128xf32> -> vector<4x128xf32>
    %c0_21 = arith.constant 0 : index
    %c0_22 = arith.constant 0 : index
    %24 = vector.load %arg9[%c0_21, %c0_22] : memref<4x1xf32, #tpu.memory_space<vmem>>, vector<4x1xf32>
    %25 = vector.broadcast %24 : vector<4x1xf32> to vector<4x128xf32>
    %26 = arith.addf %23, %25 : vector<4x128xf32>
    %27 = math.tanh %26 : vector<4x128xf32>
    %c0_23 = arith.constant 0 : index
    %c0_24 = arith.constant 0 : index
    %28 = vector.load %arg10[%c0_23, %c0_24] : memref<4x128xf32, #tpu.memory_space<vmem>>, vector<4x128xf32>
    tpu.vector_store %arg10[%c0_23, %c0_24], %27 {strides = array<i32>} : memref<4x128xf32, #tpu.memory_space<vmem>>, vector<4x128xf32>,
    return
  }
  func.func @transform_0(%arg0: i32) -> (i32, i32) {
    %c0_i32 = arith.constant 0 : i32
    %c0_i32_0 = arith.constant 0 : i32
    return %c0_i32, %arg0 : i32, i32
  }
  func.func @transform_1(%arg0: i32) -> (i32, i32) {
    %c0_i32 = arith.constant 0 : i32
    %c0_i32_0 = arith.constant 0 : i32
    %c0_i32_1 = arith.constant 0 : i32
    return %c0_i32, %c0_i32_0 : i32, i32
  }
  func.func @transform_2(%arg0: i32) -> (i32, i32) {
    %c0_i32 = arith.constant 0 : i32
    %c0_i32_0 = arith.constant 0 : i32
    %c0_i32_1 = arith.constant 0 : i32
    return %c0_i32, %c0_i32_0 : i32, i32
  }
  func.func @transform_3(%arg0: i32) -> (i32, i32) {
    %c0_i32 = arith.constant 0 : i32
    %c0_i32_0 = arith.constant 0 : i32
    %c0_i32_1 = arith.constant 0 : i32
    return %c0_i32, %c0_i32_0 : i32, i32
  }
  func.func @transform_4(%arg0: i32) -> (i32, i32) {
    %c0_i32 = arith.constant 0 : i32
    %c0_i32_0 = arith.constant 0 : i32
    %c0_i32_1 = arith.constant 0 : i32
    return %c0_i32, %c0_i32_0 : i32, i32
  }
  func.func @transform_5(%arg0: i32) -> (i32, i32) {
    %c0_i32 = arith.constant 0 : i32
    %c0_i32_0 = arith.constant 0 : i32
    %c0_i32_1 = arith.constant 0 : i32
    return %c0_i32, %c0_i32_0 : i32, i32
  }
  func.func @transform_6(%arg0: i32) -> (i32, i32) {
    %c0_i32 = arith.constant 0 : i32
    %c0_i32_0 = arith.constant 0 : i32
    %c0_i32_1 = arith.constant 0 : i32
    return %c0_i32, %c0_i32_0 : i32, i32
  }
  func.func @transform_7(%arg0: i32) -> (i32, i32) {
    %c0_i32 = arith.constant 0 : i32
    %c0_i32_0 = arith.constant 0 : i32
    %c0_i32_1 = arith.constant 0 : i32
    return %c0_i32, %c0_i32_0 : i32, i32
  }
  func.func @transform_8(%arg0: i32) -> (i32, i32) {
    %c0_i32 = arith.constant 0 : i32
    %c0_i32_0 = arith.constant 0 : i32
    %c0_i32_1 = arith.constant 0 : i32
    return %c0_i32, %c0_i32_0 : i32, i32
  }
  func.func @transform_9(%arg0: i32) -> (i32, i32) {
    %c0_i32 = arith.constant 0 : i32
    %c0_i32_0 = arith.constant 0 : i32
    return %c0_i32, %arg0 : i32, i32
  }
}

</mosaic_0001>

<bundles_post_ra>
// kernel: tpu_custom_call.1
= control target key start
LH: loop header
LB: loop body
LE: loop exit
PB: predicated region body
PF: predicated region fallthrough
CT: control target
= control target key end

     0   :  { %vm89_vm0 = vcmask 64512   ;;  %v676_v3 = vmov 0   ;;  %vm255_vm1 = vcmask 523264   ;;  %vm371_vm2 = vcmask 261120   ;;  %s840_s0 = inlined_call_operand.vmem [shape: f32[8,2], index: 0, kind: input, shape index: {}]   ;;  %s841_s1 = inlined_call_operand.vmem [shape: f32[64,8], index: 1, kind: input, shape index: {}]   ;;  %s842_s2 = inlined_call_operand.vmem [shape: f32[64,1], index: 2, kind: input, shape index: {}]   ;;  %s843_s4 = inlined_call_operand.vmem [shape: f32[32,1], index: 4, kind: input, shape index: {}]   ;;  %s844_s6 = inlined_call_operand.vmem [shape: f32[16,1], index: 6, kind: input, shape index: {}]   ;;  %s845_s8 = inlined_call_operand.vmem [shape: f32[4,1], index: 8, kind: input, shape index: {}]   ;;  %s846_s3 = inlined_call_operand.vmem [shape: f32[32,64], index: 3, kind: input, shape index: {}]   ;;  %s847_s5 = inlined_call_operand.vmem [shape: f32[16,32], index: 5, kind: input, shape index: {}]   ;;  %s848_s7 = inlined_call_operand.vmem [shape: f32[4,16], index: 7, kind: input, shape index: {}]   ;;  %s849_s9 = inlined_call_operand.vmem [shape: f32[4,2], index: 9, kind: output, shape index: {}]  }
   0x1   :  { %v32_v0 = vld [vmem:[%s840_s0] sm:$0xff]  ;;  %v34_v2 = vld [vmem:[%s841_s1 + $0x8] sm:$0xff]  ;;  %672 = vset.pattern.permute.xlu0 %v676_v3  ;;  %673 = vset.pattern.permute.xlu1 %v676_v3  ;;  %v35_v4 = vld [vmem:[%s841_s1 + $0x10] sm:$0xff]  ;;  %vm678_vm3 = vmmov 0   ;;  %vm462_vm4 = vcmask 130048  }
   0x2   :  { %v33_v1 = vld [vmem:[%s841_s1] sm:$0xff]  ;;  %587 = vmatprep.subr.mxu0 %v32_v0  ;;  %v43_v6 = vld [vmem:[%s842_s2 + $0x10] sm:$0xff]  ;;  %v36_v7 = vld [vmem:[%s841_s1 + $0x18] sm:$0xff] }
   0x3   :  { %589 = vmatprep.mubr.msk.f32.mxu0 %vm89_vm0, %v33_v1  ;;  %588 = vmatpush3.msra.mxu0 %v32_v0  ;;  %v41_v5 = vld [vmem:[%s842_s2] sm:$0xff]  ;;  %v42_v9 = vld [vmem:[%s842_s2 + $0x8] sm:$0xff]  ;;  %v44_v10 = vld [vmem:[%s842_s2 + $0x18] sm:$0xff] }
   0x4   :  { %590 = vmatmul.mubr.msk.f32.vlgmr.msra.gmra.mrb[0].mxu0 %vm89_vm0, %v34_v2  ;;  %51 = vperm.xlu0 %672, %v41_v5   ;;  %v37_v8 = vld [vmem:[%s841_s1 + $0x20] sm:$0xff]  ;;  %v38_v11 = vld [vmem:[%s841_s1 + $0x28] sm:$0xff]  ;;  %v39_v12 = vld [vmem:[%s841_s1 + $0x30] sm:$0xff] }
   0x5   :  { %592 = vmatprep.mubr.msk.f32.mxu0 %vm89_vm0, %v35_v4  ;;  %61 = vperm.xlu1 %673, %v43_v6   ;;  %v45_v13 = vld [vmem:[%s842_s2 + $0x20] sm:$0xff]  ;;  %v46_v14 = vld [vmem:[%s842_s2 + $0x28] sm:$0xff]  ;;  %v40_v15 = vld [vmem:[%s841_s1 + $0x38] sm:$0xff] }
   0x6   :  { %v47_v16 = vld [vmem:[%s842_s2 + $0x30] sm:$0xff]  ;;  %v48_v17 = vld [vmem:[%s842_s2 + $0x38] sm:$0xff]  ;;  %v231_v18 = vld [vmem:[%s843_s4] sm:$0xff] }
   0x7   :  { %v232_v19 = vld [vmem:[%s843_s4 + $0x8] sm:$0xff]  ;;  %v233_v20 = vld [vmem:[%s843_s4 + $0x10] sm:$0xff]  ;;  %v234_v21 = vld [vmem:[%s843_s4 + $0x18] sm:$0xff] }
   0x8   :  { %593 = vmatmul.mubr.msk.f32.gmra.mrb[2].mxu0 %vm89_vm0, %v36_v7  ;;  %56 = vperm.xlu0 %672, %v42_v9   ;;  %v359_v22 = vld [vmem:[%s844_s6] sm:$0xff]  ;;  %v360_v23 = vld [vmem:[%s844_s6 + $0x8] sm:$0xff]  ;;  %v229_v63 = vld [vmem:[%s846_s3 + $0x10] sm:$0xff] }
   0x9   :  { %595 = vmatprep.mubr.msk.f32.mxu0 %vm89_vm0, %v37_v8  ;;  %66 = vperm.xlu1 %673, %v44_v10   ;;  %v456_v24 = vld [vmem:[%s845_s8] sm:$0xf]  ;;  %v228_v62 = vld [vmem:[%s846_s3 + $0x8] sm:$0xff]  ;;  %v230_v0 = vld [vmem:[%s846_s3 + $0x18] sm:$0xff] }
   0xa   :  { %v227_v25 = vld [vmem:[%s846_s3] sm:$0xff] }
   0xb   :  { %617 = vmatprep.mubr.msk.f32.mxu1 %vm255_vm1, %v227_v25  ;;  %v357_v1 = vld [vmem:[%s847_s5] sm:$0xff] }
   0xc   :  { %596 = vmatmul.mubr.msk.f32.gmra.mrb[4].mxu0 %vm89_vm0, %v38_v11  ;;  %71 = vperm.xlu0 %672, %v45_v13  }
   0xd   :  { %598 = vmatprep.mubr.msk.f32.mxu0 %vm89_vm0, %v39_v12  ;;  %76 = vperm.xlu1 %673, %v46_v14  }
  0x10   :  { %599 = vmatmul.mubr.msk.f32.gmra.mrb[6].mxu0 %vm89_vm0, %v40_v15  ;;  %81 = vperm.xlu0 %672, %v47_v16  }
  0x11   :  { %86 = vperm.xlu1 %673, %v48_v17   ;;  %631 = vmatprep.mubr.msk.f32.mxu0 %vm371_vm2, %v357_v1 }
  0x14   :  { %237 = vperm.xlu0 %672, %v231_v18  }
  0x15   :  { %242 = vperm.xlu1 %673, %v232_v19  }
  0x18   :  { %247 = vperm.xlu0 %672, %v233_v20   ;;  %v358_v20 = vld [vmem:[%s847_s5 + $0x8] sm:$0xff] }
  0x19   :  { %252 = vperm.xlu1 %673, %v234_v21   ;;  %v677_v21 = vmov 0.0|0.0  }
  0x1c   :  { %363 = vperm.xlu0 %672, %v359_v22   ;;  %v679_v22 = vmov 0.0  }
  0x1d   :  { %368 = vperm.xlu1 %673, %v360_v23  }
  0x20   :  { %459 = vperm.xlu0 %672, %v456_v24  }
  0x83   :  { %v52_v26 = vpop.permute.xlu0 %51 }
  0x84   :  { %v62_v27 = vpop.permute.xlu1 %61 }
  0x87   :  { %v57_v28 = vpop.permute.xlu0 %56 }
  0x88   :  { %v67_v29 = vpop.permute.xlu1 %66 }
  0x8b   :  { %v72_v42 = vpop.permute.xlu0 %71 }
  0x8c   :  { %v77_v39 = vpop.permute.xlu1 %76 }
  0x8f   :  { %v82_v54 = vpop.permute.xlu0 %81 }
  0x90   :  { %v87_v51 = vpop.permute.xlu1 %86 }
  0x93   :  { %v238_v3 = vpop.permute.xlu0 %237 }
  0x94   :  { %v243_v2 = vpop.permute.xlu1 %242 }
  0x97   :  { %v248_v12 = vpop.permute.xlu0 %247 }
  0x98   :  { %v253_v9 = vpop.permute.xlu1 %252 }
  0x9b   :  { %v364_v25 = vpop.permute.xlu0 %363 }
  0x9c   :  { %v369_v23 = vpop.permute.xlu1 %368 }
  0xd7   :  { %v591_v30 = vpop.f32.mrb[0].mxu0 }
  0xd8   :  { %v186_v31 = vadd.f32 %v591_v30, %v57_v28  ;;  %v180_v32 = vpop.f32.mrb[1].mxu0 }
  0xd9   :  { %v181_v33 = vadd.f32 %v180_v32, %v52_v26  ;;  %v455_v32 = vld [vmem:[%s848_s7] sm:$0xf] }
  0xda   :  { %v220_v34 = vmax.f32 %v186_v31, 0.0 }
  0xdb   :  { %v219_v35 = vmax.f32 %v181_v33, 0.0  ;;  %v594_v36 = vpop.f32.mrb[2].mxu0  ;;  %v460_v33 = vpop.permute.xlu0 %459 }
  0xdc   :  { %v196_v37 = vadd.f32 %v594_v36, %v67_v29  ;;  %v190_v38 = vpop.f32.mrb[3].mxu0 }
  0xdd   :  { %v191_v40 = vadd.f32 %v190_v38, %v62_v27  ;;  %v641_v41 = vpack.c.bf16 %v220_v34, %v219_v35 }
  0xde   :  { %v222_v43 = vmax.f32 %v196_v37, 0.0 }
  0xdf   :  { %v221_v44 = vmax.f32 %v191_v40, 0.0  ;;  %v597_v45 = vpop.f32.mrb[4].mxu0  ;;  %642 = vmatprep.subr.bf16.mxu1 %v641_v41 }
  0xe0   :  { %v206_v46 = vadd.f32 %v597_v45, %v77_v39  ;;  %v200_v47 = vpop.f32.mrb[5].mxu0  ;;  %644 = vmatpush3.bf16.msra.mxu1 %v641_v41 }
  0xe1   :  { %v645_v48 = vpack.c.bf16 %v222_v43, %v221_v44  ;;  %v201_v49 = vadd.f32 %v200_v47, %v72_v42 }
  0xe2   :  { %v224_v50 = vmax.f32 %v206_v46, 0.0 }
  0xe3   :  { %v223_v52 = vmax.f32 %v201_v49, 0.0  ;;  %v600_v53 = vpop.f32.mrb[6].mxu0  ;;  %646 = vmatprep.subr.bf16.mxu1 %v645_v48 }
  0xe4   :  { %v216_v55 = vadd.f32 %v600_v53, %v87_v51  ;;  %v210_v56 = vpop.f32.mrb[7].mxu0  ;;  %648 = vmatpush3.bf16.msra.mxu1 %v645_v48 }
  0xe5   :  { %v649_v57 = vpack.c.bf16 %v224_v50, %v223_v52  ;;  %v211_v58 = vadd.f32 %v210_v56, %v82_v54 }
  0xe6   :  { %v226_v59 = vmax.f32 %v216_v55, 0.0 }
  0xe7   :  { %v225_v60 = vmax.f32 %v211_v58, 0.0  ;;  %650 = vmatprep.subr.bf16.mxu1 %v649_v57 }
  0xe8   :  { %652 = vmatpush3.bf16.msra.mxu1 %v649_v57 }
  0xe9   :  { %v653_v61 = vpack.c.bf16 %v226_v59, %v225_v60 }
  0xeb   :  { %654 = vmatprep.subr.bf16.mxu1 %v653_v61 }
  0xec   :  { %656 = vmatpush3.bf16.msra.mxu1 %v653_v61 }
  0xef   :  { %618 = vmatmul.mubr.msk.f32.vlgmr.msra.gmra.mrb[0].mxu1 %vm255_vm1, %v228_v62 }
  0xf0   :  { %620 = vmatprep.mubr.msk.f32.mxu1 %vm255_vm1, %v229_v63 }
  0xf3   :  { %621 = vmatmul.mubr.msk.f32.gmra.mrb[2].mxu1 %vm255_vm1, %v230_v0 }
 0x1c2   :  { %v619_v4 = vpop.f32.mrb[0].mxu1 }
 0x1c3   :  { %v340_v5 = vadd.f32 %v619_v4, %v243_v2  ;;  %v334_v6 = vpop.f32.mrb[1].mxu1 }
 0x1c4   :  { %v335_v7 = vadd.f32 %v334_v6, %v238_v3 }
 0x1c5   :  { %v354_v8 = vmax.f32 %v340_v5, 0.0 }
 0x1c6   :  { %v353_v10 = vmax.f32 %v335_v7, 0.0  ;;  %v622_v11 = vpop.f32.mrb[2].mxu1 }
 0x1c7   :  { %v350_v13 = vadd.f32 %v622_v11, %v253_v9  ;;  %v344_v14 = vpop.f32.mrb[3].mxu1 }
 0x1c8   :  { %v657_v15 = vpack.c.bf16 %v354_v8, %v353_v10  ;;  %v345_v16 = vadd.f32 %v344_v14, %v248_v12 }
 0x1c9   :  { %v356_v17 = vmax.f32 %v350_v13, 0.0 }
 0x1ca   :  { %v355_v18 = vmax.f32 %v345_v16, 0.0  ;;  %658 = vmatprep.subr.bf16.mxu0 %v657_v15 }
 0x1cb   :  { %660 = vmatpush3.bf16.msra.mxu0 %v657_v15 }
 0x1cc   :  { %v661_v19 = vpack.c.bf16 %v356_v17, %v355_v18 }
 0x1ce   :  { %662 = vmatprep.subr.bf16.mxu0 %v661_v19 }
 0x1cf   :  { %664 = vmatpush3.bf16.msra.mxu0 %v661_v19 }
 0x1d0   :  { %665 = vmatprep.subr.bf16.mxu0 %v677_v21 }
 0x1d2   :  { %632 = vmatmul.mubr.msk.f32.vlgmr.msra.gmra.mrb[8].mxu0 %vm371_vm2, %v358_v20 }
 0x1d3   :  { %638 = vmatprep.mubr.msk.f32.mxu0 %vm678_vm3, %v679_v22 }
 0x2a5   :  { %v633_v24 = vpop.f32.mrb[8].mxu0 }
 0x2a6   :  { %v450_v26 = vadd.f32 %v633_v24, %v369_v23  ;;  %v444_v27 = vpop.f32.mrb[9].mxu0 }
 0x2a7   :  { %v445_v28 = vadd.f32 %v444_v27, %v364_v25 }
 0x2a8   :  { %v454_v29 = vmax.f32 %v450_v26, 0.0 }
 0x2a9   :  { %v453_v30 = vmax.f32 %v445_v28, 0.0 }
 0x2ab   :  { %v666_v31 = vpack.c.bf16 %v454_v29, %v453_v30 }
 0x2ad   :  { %667 = vmatpush3.bf16.msra.mxu0 %v666_v31 }
 0x2b0   :  { %639 = vmatmul.mubr.msk.f32.vlgmr.msra.gmra.mrb[10].mxu0 %vm462_vm4, %v455_v32 }
 0x383   :  { %v532_v34 = vpop.f32.mrb[10].mxu0 }
 0x384   :  { %v533_v35 = vadd.f32 %v532_v34, %v460_v33  ;;  %v640_v36 = vpop.f32.mrb[11].mxu0 }
 0x386   :  { %674 = vtanh.f32 %v533_v35 }
 0x390   :  { %v675_v37 = vpop.eup %674 }
 0x391   :  { %537 = vst [vmem:[%s849_s9] sm:$0xf] %v675_v37 }

</bundles_post_ra>
